<compile_context>
chip_gen: v5e
topology: v5e:2x2
jax: 0.10.0
libtpu: 0.0.40
codegen_flags: <defaults>
</compile_context>

<pallas_src>
import functools

import jax
import jax.numpy as jnp
from jax import lax
from jax.experimental import pallas as pl
from jax.experimental.pallas import tpu as pltpu

NEG_SLOPE = 0.1
VMEM_LIMIT = 32 * 1024 * 1024     # explicit scoped-VMEM budget; safe on v5e/v6e/v7x


def _leaky(x):
    return jnp.where(x >= 0, x, NEG_SLOPE * x)


def _round_up(x, m):
    return ((x + m - 1) // m) * m


def _pad_to(x, shape):
    pads = [(0, s - d) for d, s in zip(x.shape, shape)]
    if any(p[1] for p in pads):
        return jnp.pad(x, pads)
    return x


# ----------------------------- tiled dense matmul ---------------------------

def _dense_kernel(x_ref, w_ref, b_ref, o_ref, acc_ref, *, leaky):
    @pl.when(pl.program_id(2) == 0)
    def _():
        acc_ref[...] = jnp.zeros_like(acc_ref)

    acc_ref[...] += jnp.dot(x_ref[...], w_ref[...],
                            preferred_element_type=jnp.float32)

    @pl.when(pl.program_id(2) == pl.num_programs(2) - 1)
    def _():
        y = acc_ref[...] + b_ref[...]
        if leaky:
            y = jnp.where(y >= 0, y, NEG_SLOPE * y)
        o_ref[...] = y.astype(o_ref.dtype)


def pallas_dense(x, w, b=None, leaky=False, out_dtype=jnp.float32):
    """[M, K] @ [K, N] (+bias [N]) (+LeakyReLU).  Tiled, double-buffered, bf16 MXU."""
    M, K = x.shape
    N = w.shape[1]
    tm = min(256, _round_up(M, 8))
    tk = min(512, _round_up(K, 128))
    tn = min(512, _round_up(N, 128))
    Mp, Kp, Np = _round_up(M, tm), _round_up(K, tk), _round_up(N, tn)
    xp = _pad_to(x.astype(jnp.bfloat16), (Mp, Kp))
    wp = _pad_to(w.astype(jnp.bfloat16), (Kp, Np))
    if b is None:
        bp = jnp.zeros((1, Np), jnp.float32)
    else:
        bp = _pad_to(b.astype(jnp.float32).reshape(1, N), (1, Np))
    out = pl.pallas_call(
        functools.partial(_dense_kernel, leaky=leaky),
        grid=(Mp // tm, Np // tn, Kp // tk),
        in_specs=[pl.BlockSpec((tm, tk), lambda i, j, k: (i, k)),
                  pl.BlockSpec((tk, tn), lambda i, j, k: (k, j)),
                  pl.BlockSpec((1, tn), lambda i, j, k: (0, j))],
        out_specs=pl.BlockSpec((tm, tn), lambda i, j, k: (i, j)),
        out_shape=jax.ShapeDtypeStruct((Mp, Np), out_dtype),
        scratch_shapes=[pltpu.VMEM((tm, tn), jnp.float32)],
        compiler_params=pltpu.CompilerParams(
            dimension_semantics=("parallel", "parallel", "arbitrary"),
            vmem_limit_bytes=VMEM_LIMIT),
    )(xp, wp, bp)
    if (Mp, Np) != (M, N):
        out = out[:M, :N]
    return out


# ------------------------ batched A @ B^T (biaffine) ------------------------

def _bmm_nt_kernel(a_ref, b_ref, o_ref):
    o_ref[...] = lax.dot_general(
        a_ref[0], b_ref[0],
        dimension_numbers=(((1,), (1,)), ((), ())),
        preferred_element_type=jnp.float32)[None]


def pallas_bmm_nt(a, b):
    """[B, M, K] x [B, N, K] -> [B, M, N]  (contract last dims; N is lane-dense)."""
    B, M, K = a.shape
    N = b.shape[1]
    return pl.pallas_call(
        _bmm_nt_kernel,
        grid=(B,),
        in_specs=[pl.BlockSpec((1, M, K), lambda i: (i, 0, 0)),
                  pl.BlockSpec((1, N, K), lambda i: (i, 0, 0))],
        out_specs=pl.BlockSpec((1, M, N), lambda i: (i, 0, 0)),
        out_shape=jax.ShapeDtypeStruct((B, M, N), jnp.float32),
        compiler_params=pltpu.CompilerParams(
            dimension_semantics=("parallel",), vmem_limit_bytes=VMEM_LIMIT),
    )(a.astype(jnp.bfloat16), b.astype(jnp.bfloat16))


# -------------------------- fused softmax @ values --------------------------

def _softmax_matmul_kernel(s_ref, v_ref, o_ref):
    s = s_ref[...]                                             # [Gb, M, N]
    s = s - jnp.max(s, axis=-1, keepdims=True)
    e = jnp.exp(s)
    p = e * pl.reciprocal(jnp.sum(e, axis=-1, keepdims=True), approx=True)
    o_ref[...] = jnp.einsum('gmn,gnd->gmd', p.astype(v_ref.dtype), v_ref[...],
                            preferred_element_type=jnp.float32)


def pallas_softmax_matmul(scores, values):
    """softmax(scores, -1) @ values; scores [G,M,N], values [G,N,D]."""
    G, M, N = scores.shape
    D = values.shape[2]
    per_g = 4 * (M * N + M * D) + 2 * (M * N + N * D)
    Gb = int(max(1, min(G, (4 * 1024 * 1024) // max(per_g, 1))))
    Gp = _round_up(G, Gb)
    s = _pad_to(scores.astype(jnp.float32), (Gp, M, N))
    v = _pad_to(values.astype(jnp.bfloat16), (Gp, N, D))
    out = pl.pallas_call(
        _softmax_matmul_kernel,
        grid=(Gp // Gb,),
        in_specs=[pl.BlockSpec((Gb, M, N), lambda i: (i, 0, 0)),
                  pl.BlockSpec((Gb, N, D), lambda i: (i, 0, 0))],
        out_specs=pl.BlockSpec((Gb, M, D), lambda i: (i, 0, 0)),
        out_shape=jax.ShapeDtypeStruct((Gp, M, D), jnp.float32),
        compiler_params=pltpu.CompilerParams(
            dimension_semantics=("parallel",), vmem_limit_bytes=VMEM_LIMIT),
    )(s, v)
    return out[:G] if Gp != G else out


# ----------------------------- tiled masked max -----------------------------

def _masked_max_kernel(minv_ref, mask_ref, val_ref, o_ref):
    minv = minv_ref[0, 0]
    K, tt = mask_ref.shape[1], mask_ref.shape[2]
    td = val_ref.shape[2]
    m3 = jnp.broadcast_to((mask_ref[0] != 0)[:, :, None], (K, tt, td))
    v3 = jnp.broadcast_to(val_ref[0][None, :, :], (K, tt, td))
    bm = jnp.max(jnp.where(m3, v3, minv), axis=1)[None]

    @pl.when(pl.program_id(2) == 0)
    def _():
        o_ref[...] = bm

    @pl.when(pl.program_id(2) > 0)
    def _():
        o_ref[...] = jnp.maximum(o_ref[...], bm)


def pallas_masked_max(values, mask, min_val):
    """out[b,k,d] = max_t( mask[b,k,t] ? values[b,t,d] : min_val ).

    T and D are tiled so the in-kernel (K, tt, td) intermediate stays bounded.
    """
    B, T, D = values.shape
    K = mask.shape[1]
    if T <= 128:
        tt, Tp = T, T
    else:
        tt, Tp = 128, _round_up(T, 128)
    if D <= 256:
        td, Dp = D, D
    else:
        td, Dp = 256, _round_up(D, 256)
    vals = _pad_to(values.astype(jnp.float32), (B, Tp, Dp))
    msk = _pad_to(mask.astype(jnp.int32), (B, K, Tp))        # padded T -> mask 0
    minv = jnp.asarray(min_val, jnp.float32).reshape(1, 1)
    out = pl.pallas_call(
        _masked_max_kernel,
        grid=(B, Dp // td, Tp // tt),
        in_specs=[pl.BlockSpec(memory_space=pltpu.MemorySpace.SMEM),
                  pl.BlockSpec((1, K, tt), lambda b, d, t: (b, 0, t)),
                  pl.BlockSpec((1, tt, td), lambda b, d, t: (b, t, d))],
        out_specs=pl.BlockSpec((1, K, td), lambda b, d, t: (b, 0, d)),
        out_shape=jax.ShapeDtypeStruct((B, K, Dp), jnp.float32),
        compiler_params=pltpu.CompilerParams(
            dimension_semantics=("parallel", "parallel", "arbitrary"),
            vmem_limit_bytes=VMEM_LIMIT),
    )(minv, msk, vals)
    return out[:, :, :D] if Dp != D else out


# -------------------- fused conv1(1x1) + conv2(3x3) + score -----------------

def _conv_attn_kernel(a_ref, bc_ref, pre_ref, w1p_ref, w2_ref, b2_ref, sw_ref,
                      fmap_ref, score_ref, hpad_ref):
    M, C = a_ref.shape[1], a_ref.shape[2]
    N = bc_ref.shape[1]
    Cpre = pre_ref.shape[3]

    # conv1 (1x1) decomposed: x-part (+bias) and y-part precomputed outside,
    # the pre_conv channels are contracted here.
    p1 = jnp.dot(pre_ref[0].reshape(M * N, Cpre), w1p_ref[...],
                 preferred_element_type=jnp.float32).reshape(M, N, C)
    h1 = p1 + a_ref[0][:, None, :] + bc_ref[0][None, :, :]
    h1 = jnp.where(h1 >= 0, h1, NEG_SLOPE * h1)

    # zero-padded halo buffer in VMEM (no HBM im2col).
    hpad_ref[...] = jnp.zeros_like(hpad_ref)
    hpad_ref[pl.ds(1, M), pl.ds(1, N), :] = h1.astype(hpad_ref.dtype)

    # conv2 (3x3, padding=1) = 9 shifted matmuls accumulated in f32.
    acc = jnp.zeros((M * N, C), jnp.float32)
    for k in range(9):
        ki, kj = k // 3, k % 3
        patch = hpad_ref[pl.ds(ki, M), pl.ds(kj, N), :].reshape(M * N, C)
        acc = acc + jnp.dot(patch, w2_ref[k], preferred_element_type=jnp.float32)
    fm = acc + b2_ref[...]
    fm = jnp.where(fm >= 0, fm, NEG_SLOPE * fm)
    fmap_ref[...] = fm.reshape(1, M, N, C).astype(fmap_ref.dtype)

    # fused score head; weight padded to 128 lanes -> lane-dense store.
    sc = jnp.dot(fm.astype(jnp.bfloat16), sw_ref[...],
                 preferred_element_type=jnp.float32)
    sc = jnp.where(sc >= 0, sc, NEG_SLOPE * sc)
    score_ref[...] = sc.reshape(1, M, N, sw_ref.shape[1])


def pallas_conv_block(a, bc, pre, w1p, w2, b2, sw_pad):
    B, M, C = a.shape
    N = bc.shape[1]
    Cpre = pre.shape[3]
    HPAD = sw_pad.shape[1]
    fmap, score = pl.pallas_call(
        _conv_attn_kernel,
        grid=(B,),
        in_specs=[pl.BlockSpec((1, M, C), lambda i: (i, 0, 0)),
                  pl.BlockSpec((1, N, C), lambda i: (i, 0, 0)),
                  pl.BlockSpec((1, M, N, Cpre), lambda i: (i, 0, 0, 0)),
                  pl.BlockSpec((Cpre, C), lambda i: (0, 0)),
                  pl.BlockSpec((9, C, C), lambda i: (0, 0, 0)),
                  pl.BlockSpec((1, C), lambda i: (0, 0)),
                  pl.BlockSpec((C, HPAD), lambda i: (0, 0))],
        out_specs=(pl.BlockSpec((1, M, N, C), lambda i: (i, 0, 0, 0)),
                   pl.BlockSpec((1, M, N, HPAD), lambda i: (i, 0, 0, 0))),
        out_shape=(jax.ShapeDtypeStruct((B, M, N, C), jnp.float32),
                   jax.ShapeDtypeStruct((B, M, N, HPAD), jnp.float32)),
        scratch_shapes=[pltpu.VMEM((M + 2, N + 2, C), jnp.bfloat16)],
        compiler_params=pltpu.CompilerParams(
            dimension_semantics=("parallel",), vmem_limit_bytes=VMEM_LIMIT),
    )(a.astype(jnp.float32), bc.astype(jnp.float32), pre.astype(jnp.bfloat16),
      w1p.astype(jnp.bfloat16), w2.astype(jnp.bfloat16),
      b2.reshape(1, -1).astype(jnp.float32), sw_pad.astype(jnp.bfloat16))
    return fmap, score


# ------------------------------- model glue --------------------------------

def lstm_dir(x_seq, Wih, Whh, bias, reverse):
    """One LSTM direction.  Input projections run through the Pallas dense kernel."""
    B, L, E = x_seq.shape
    Hh = Whh.shape[1]
    gates_x = pallas_dense(x_seq.reshape(B * L, E), Wih.T, bias).reshape(B, L, 4 * Hh)
    if reverse:
        gates_x = gates_x[:, ::-1, :]

    def step(carry, gx):
        h, c = carry
        # TODO(synk): recurrent h @ Whh.T is sequential and tiny; kept in plain JAX.
        g = gx + h @ Whh.T
        i, f, gg, o = jnp.split(g, 4, axis=-1)
        i = jax.nn.sigmoid(i)
        f = jax.nn.sigmoid(f)
        gg = jnp.tanh(gg)
        o = jax.nn.sigmoid(o)
        c = f * c + i * gg
        h = o * jnp.tanh(c)
        return (h, c), h

    h0 = jnp.zeros((B, Hh), jnp.float32)
    c0 = jnp.zeros((B, Hh), jnp.float32)
    _, hs = lax.scan(step, (h0, c0), gates_x.transpose(1, 0, 2))
    hs = hs.transpose(1, 0, 2)
    if reverse:
        hs = hs[:, ::-1, :]
    return hs


def bilstm(x, p):
    hf = lstm_dir(x, p['Wih_f'], p['Whh_f'], p['b_f'], reverse=False)
    hb = lstm_dir(x, p['Wih_b'], p['Whh_b'], p['b_b'], reverse=True)
    return jnp.concatenate([hf, hb], -1)


def conv_attention_layer(x, y, p, pre_conv, mask, residual=True, self_loop=True):
    B, M, H = x.shape
    N = y.shape[1]
    heads = p['score_w'].shape[1]
    C = p['conv1_b'].shape[0]
    ori_x, ori_y = x, y

    # conv1 (1x1 over concat[x_bcast, y_bcast, pre]) decomposed into three matmuls
    # to avoid materializing the [B,M,N,2H+Cpre] concat in HBM.
    w1 = p['conv1_w']                      # (2H + Cpre, C)
    a = pallas_dense(x.reshape(B * M, H), w1[:H], p['conv1_b']).reshape(B, M, C)
    bc = pallas_dense(y.reshape(B * N, H), w1[H:2 * H]).reshape(B, N, C)
    w1p = w1[2 * H:]

    HPAD = max(128, _round_up(heads, 128))
    sw_pad = _pad_to(p['score_w'], (C, HPAD))

    fea_map, sc = pallas_conv_block(a, bc, pre_conv, w1p, p['conv2_w'],
                                    p['conv2_b'], sw_pad)
    scores = sc[..., :heads].transpose(0, 3, 1, 2)            # [B, heads, M, N]
    if mask is not None:
        scores = jnp.where(mask[:, None, :, :] == 0, -9e10, scores)

    d = H // heads
    x_l = pallas_dense(x.reshape(B * M, H), p['lin1_w']).reshape(B, M, H)
    y_l = pallas_dense(y.reshape(B * N, H), p['lin2_w']).reshape(B, N, H)

    yh = y_l.reshape(B, N, heads, d).transpose(0, 2, 1, 3).reshape(B * heads, N, d)
    xh = x_l.reshape(B, M, heads, d).transpose(0, 2, 1, 3).reshape(B * heads, M, d)
    s_flat = scores.reshape(B * heads, M, N)

    out_x = pallas_softmax_matmul(s_flat, yh)
    out_x = out_x.reshape(B, heads, M, d).transpose(0, 2, 1, 3).reshape(B, M, H)
    out_y = pallas_softmax_matmul(s_flat.transpose(0, 2, 1), xh)
    out_y = out_y.reshape(B, heads, N, d).transpose(0, 2, 1, 3).reshape(B, N, H)

    if self_loop:
        out_x = out_x + x_l
        out_y = out_y + y_l
    out_x = _leaky(out_x)
    out_y = _leaky(out_y)
    if residual:
        out_x = out_x + ori_x
        out_y = out_y + ori_y
    return out_x, out_y, fea_map


def conv_attention(x, y, fea_map, mask, layer_params):
    for p in layer_params:
        x, y, fea_map = conv_attention_layer(x, y, p, fea_map, mask)
    return x, y, fea_map                                     # channels-last [B, M, N, C]


def biaffine_padded(x, y, W):
    """einsum('bxi,oij,byj->boxy').permute(0,2,3,1), bias_x = bias_y = True.
    Returns [B, E, E, OP] with OP = round_up(n_out, 128); extra columns are zero."""
    B, E, H = x.shape
    O, I, J = W.shape
    OP, IP, JP = _round_up(O, 128), _round_up(I, 128), _round_up(J, 128)
    ones = jnp.ones((B, E, 1), jnp.float32)
    xb = _pad_to(jnp.concatenate([x, ones], -1), (B, E, IP))
    yb = _pad_to(jnp.concatenate([y, ones], -1), (B, E, JP))
    Wp = _pad_to(W.astype(jnp.float32), (OP, IP, JP))
    Wt = Wp.transpose(2, 0, 1).reshape(JP, OP * IP)           # columns = (o, i)
    # stage 1: R[b, y, o, i] = sum_j yb[b,y,j] * W[o,i,j]
    R = pallas_dense(yb.reshape(B * E, JP), Wt, out_dtype=jnp.bfloat16)
    R = R.reshape(B, E * OP, IP)
    # stage 2: S[b, x, y, o] = sum_i xb[b,x,i] * R[b,y,o,i]  (o lane-dense)
    S = pallas_bmm_nt(xb, R)                                  # [B, E, E*OP]
    return S.reshape(B, E, E, OP)


def mrn_forward(params, doc_inputs, ner_inputs, dis_inputs, ref_inputs,
                doc2ent_mask, doc2men_mask, men2ent_mask, ent2ent_mask, men2men_mask):
    del ref_inputs, ent2ent_mask                              # unused in forward
    B, L = doc_inputs.shape

    tok = params['word_emb'][doc_inputs]
    ner = params['ner_emb'][ner_inputs]
    embs = jnp.concatenate([tok, ner], -1)                    # dropout1 = identity (eval)

    # Inputs have no padding (all tokens nonzero), so pack/pad_packed reduce to BiLSTM.
    outs = bilstm(embs, params['lstm'])                       # [B, L, hid]
    H = outs.shape[-1]

    max_e = doc2ent_mask.shape[1]

    # NOTE: jnp.min fills replicate torch.min(...).item(); a fixed constant would
    # skip these reductions but changes all-zero-mask-row results.
    men_reps = pallas_masked_max(outs, doc2men_mask, jnp.min(outs))   # [B, M, hid]

    dis_emb = params['dis_emb'][dis_inputs]                   # [B, M, M, dis] channels-last
    x, y, fea_maps = conv_attention(men_reps, men_reps, dis_emb, men2men_mask,
                                    params['conv_att'])       # fea_maps: [B, M, M, C]

    x_e = pallas_masked_max(x, men2ent_mask, jnp.min(x))      # [B, E, hid]
    y_e = pallas_masked_max(y, men2ent_mask, jnp.min(y))      # [B, E, hid]

    # Entity-pair feature map pooling (the PyTorch chunk loop is only a memory opt).
    min_f = jnp.min(fea_maps)
    Bc, M, N, C = fea_maps.shape
    step1 = pallas_masked_max(fea_maps.reshape(Bc, M, N * C), men2ent_mask, min_f)
    step1 = step1.reshape(Bc, max_e, N, C)                    # [B, Ex, N, C]
    t = step1.transpose(0, 2, 1, 3).reshape(Bc, N, max_e * C)
    fea_ee = pallas_masked_max(t, men2ent_mask, min_f).reshape(Bc, max_e, max_e, C)

    ent_sub = pallas_dense(x_e.reshape(B * max_e, H), params['mlp_sub_w'],
                           params['mlp_sub_b'], leaky=True).reshape(B, max_e, H)
    ent_obj = pallas_dense(y_e.reshape(B * max_e, H), params['mlp_obj_w'],
                           params['mlp_obj_b'], leaky=True).reshape(B, max_e, H)

    rel1 = biaffine_padded(ent_sub, ent_obj, params['biaffine_w'])    # [B,E,E,128]

    n_rel = params['lin_out_w'].shape[1]
    OP = rel1.shape[-1]
    fr = pallas_dense(fea_ee.reshape(B * max_e * max_e, C), params['mlp_rel_w'],
                      params['mlp_rel_b'], leaky=True)
    lin_w = _pad_to(params['lin_out_w'], (C, OP))             # pad 97 -> 128 lanes
    lin_b = _pad_to(params['lin_out_b'], (OP,))
    rel2 = pallas_dense(fr, lin_w, lin_b).reshape(B, max_e, max_e, OP)

    return (rel1 + rel2)[..., :n_rel]


# ------------------------------ parameter init -----------------------------

def _normal(key, shape, scale=0.05):
    return (scale * jax.random.normal(key, shape)).astype(jnp.float32)


def init_params(key, cfg):
    keys = iter(jax.random.split(key, 64))
    hid, C, heads = cfg['hid'], cfg['channels'], cfg['heads']
    tok, nerd, dis = cfg['tok'], cfg['ner'], cfg['dis']
    emb = tok + nerd
    Hh = hid // 2
    p = {}
    p['word_emb'] = _normal(next(keys), (cfg['vocab'], tok), 0.1)
    p['ner_emb'] = _normal(next(keys), (7, nerd), 0.1)
    p['dis_emb'] = _normal(next(keys), (20, dis), 0.1)
    p['ref_emb'] = _normal(next(keys), (3, dis), 0.1)         # defined but unused
    p['lstm'] = dict(
        Wih_f=_normal(next(keys), (4 * Hh, emb)),
        Whh_f=_normal(next(keys), (4 * Hh, Hh)),
        b_f=_normal(next(keys), (4 * Hh,)),
        Wih_b=_normal(next(keys), (4 * Hh, emb)),
        Whh_b=_normal(next(keys), (4 * Hh, Hh)),
        b_b=_normal(next(keys), (4 * Hh,)),
    )
    layers = []
    for i in range(cfg['layers']):
        pre = dis if i == 0 else C
        in_ch = hid * 2 + pre
        layers.append(dict(
            conv1_w=_normal(next(keys), (in_ch, C)),
            conv1_b=_normal(next(keys), (C,)),
            conv2_w=_normal(next(keys), (9, C, C)),           # [ki*3+kj, Cin, Cout]
            conv2_b=_normal(next(keys), (C,)),
            score_w=_normal(next(keys), (C, heads)),
            lin1_w=_normal(next(keys), (hid, hid)),
            lin2_w=_normal(next(keys), (hid, hid)),
        ))
    p['conv_att'] = layers
    p['mlp_sub_w'] = _normal(next(keys), (hid, hid))
    p['mlp_sub_b'] = _normal(next(keys), (hid,))
    p['mlp_obj_w'] = _normal(next(keys), (hid, hid))
    p['mlp_obj_b'] = _normal(next(keys), (hid,))
    fan = hid + 1
    p['biaffine_w'] = (jax.random.normal(next(keys), (cfg['n_rel'], fan, fan))
                       * (2.0 / (fan + fan)) ** 0.5).astype(jnp.float32)
    p['mlp_rel_w'] = _normal(next(keys), (C, C))
    p['mlp_rel_b'] = _normal(next(keys), (C,))
    p['lin_out_w'] = _normal(next(keys), (C, cfg['n_rel']))
    p['lin_out_b'] = _normal(next(keys), (cfg['n_rel'],))
    return p


# ---------------------------------- main ------------------------------------

if __name__ == "__main__":
    key = jax.random.PRNGKey(0)
    B, L, MAXM, MAXE = 2, 12, 8, 4
    cfg = dict(vocab=30, tok=16, ner=8, dis=8, hid=32, channels=32,
               layers=2, heads=1, n_rel=97)

    kp, kd = jax.random.split(key)
    params = init_params(kp, cfg)
    ks = jax.random.split(kd, 8)

    # nonzero token ids => every sequence has full length L
    doc_inputs = jax.random.randint(ks[0], (B, L), 1, cfg['vocab'])
    ner_inputs = jax.random.randint(ks[1], (B, L), 0, 7)
    dis_inputs = jax.random.randint(ks[2], (B, MAXM, MAXM), 0, 20)
    ref_inputs = jax.random.randint(ks[3], (B, MAXM, MAXM), 0, 3)
    doc2ent_mask = jax.random.bernoulli(ks[4], 0.5, (B, MAXE, L)).astype(jnp.int32)
    doc2men_mask = jax.random.bernoulli(ks[5], 0.5, (B, MAXM, L)).astype(jnp.int32)
    men2ent_mask = jax.random.bernoulli(ks[6], 0.5, (B, MAXE, MAXM)).astype(jnp.int32)
    men2men_mask = jax.random.bernoulli(ks[7], 0.7, (B, MAXM, MAXM)).astype(jnp.int32)
    ent2ent_mask = jnp.ones((B, MAXE, MAXE), jnp.int32)

    out = mrn_forward(params, doc_inputs, ner_inputs, dis_inputs, ref_inputs,
                      doc2ent_mask, doc2men_mask, men2ent_mask, ent2ent_mask,
                      men2men_mask)
    jax.block_until_ready(out)
    assert out.shape == (B, MAXE, MAXE, cfg['n_rel'])
    assert bool(jnp.all(jnp.isfinite(out)))
    print("KERNEL_OK")
</pallas_src>

<mosaic_0001>
module attributes {stable_mosaic.version = 11 : i64} {
  func.func @_dense_kernel(%arg0: i32, %arg1: i32, %arg2: i32, %arg3: memref<24x128xbf16, #tpu.memory_space<vmem>>, %arg4: memref<128x128xbf16, #tpu.memory_space<vmem>>, %arg5: memref<1x128xf32, #tpu.memory_space<vmem>>, %arg6: memref<24x128xf32, #tpu.memory_space<vmem>>, %arg7: memref<24x128xf32, #tpu.memory_space<vmem>>) attributes {dimension_semantics = [#tpu.dimension_semantics<parallel>, #tpu.dimension_semantics<parallel>, #tpu.dimension_semantics<arbitrary>], iteration_bounds = array<i64: 1, 1, 1>, scalar_prefetch = 0 : i64, scratch_operands = 1 : i64, tpu.core_type = #tpu.core_type<tc>, window_params = [{transform_indices = @transform_0, window_bounds = array<i64: 24, 128>}, {transform_indices = @transform_1, window_bounds = array<i64: 128, 128>}, {transform_indices = @transform_2, window_bounds = array<i64: 1, 128>}, {transform_indices = @transform_3, window_bounds = array<i64: 24, 128>}]} {
    %c0_i32 = arith.constant 0 : i32
    %0 = arith.cmpi eq, %arg2, %c0_i32 : i32
    %1 = arith.extui %0 : i1 to i32
    %c0_i32_0 = arith.constant 0 : i32
    %2 = arith.cmpi ne, %1, %c0_i32_0 : i32
    scf.if %2 {
      %cst_10 = arith.constant 0.000000e+00 : f32
      %12 = vector.broadcast %cst_10 : f32 to vector<24x128xf32>
      %c0_11 = arith.constant 0 : index
      %c0_12 = arith.constant 0 : index
      %13 = vector.load %arg7[%c0_11, %c0_12] : memref<24x128xf32, #tpu.memory_space<vmem>>, vector<24x128xf32>
      tpu.vector_store %arg7[%c0_11, %c0_12], %12 {strides = array<i32>} : memref<24x128xf32, #tpu.memory_space<vmem>>, vector<24x128xf32>,
    } else {
    }
    %c0 = arith.constant 0 : index
    %c0_1 = arith.constant 0 : index
    %3 = vector.load %arg7[%c0, %c0_1] : memref<24x128xf32, #tpu.memory_space<vmem>>, vector<24x128xf32>
    %c0_2 = arith.constant 0 : index
    %c0_3 = arith.constant 0 : index
    %4 = vector.load %arg3[%c0_2, %c0_3] : memref<24x128xbf16, #tpu.memory_space<vmem>>, vector<24x128xbf16>
    %c0_4 = arith.constant 0 : index
    %c0_5 = arith.constant 0 : index
    %5 = vector.load %arg4[%c0_4, %c0_5] : memref<128x128xbf16, #tpu.memory_space<vmem>>, vector<128x128xbf16>
    %cst = arith.constant dense<0.000000e+00> : vector<24x128xf32>
    %6 = tpu.matmul %4, %5, %cst {dimension_numbers = #tpu.dot_dimension_numbers<[1], [0], [0], [1], [0, 0, 1, 1], [], []>} : vector<24x128xbf16>, vector<128x128xbf16>, vector<24x128xf32> -> vector<24x128xf32>
    %7 = arith.addf %3, %6 : vector<24x128xf32>
    %c0_6 = arith.constant 0 : index
    %c0_7 = arith.constant 0 : index
    %8 = vector.load %arg7[%c0_6, %c0_7] : memref<24x128xf32, #tpu.memory_space<vmem>>, vector<24x128xf32>
    tpu.vector_store %arg7[%c0_6, %c0_7], %7 {strides = array<i32>} : memref<24x128xf32, #tpu.memory_space<vmem>>, vector<24x128xf32>,
    %c0_i32_8 = arith.constant 0 : i32
    %9 = arith.cmpi eq, %arg2, %c0_i32_8 : i32
    %10 = arith.extui %9 : i1 to i32
    %c0_i32_9 = arith.constant 0 : i32
    %11 = arith.cmpi ne, %10, %c0_i32_9 : i32
    scf.if %11 {
      %c0_10 = arith.constant 0 : index
      %c0_11 = arith.constant 0 : index
      %12 = vector.load %arg7[%c0_10, %c0_11] : memref<24x128xf32, #tpu.memory_space<vmem>>, vector<24x128xf32>
      %c0_12 = arith.constant 0 : index
      %c0_13 = arith.constant 0 : index
      %13 = vector.load %arg5[%c0_12, %c0_13] : memref<1x128xf32, #tpu.memory_space<vmem>>, vector<1x128xf32>
      %14 = vector.broadcast %13 : vector<1x128xf32> to vector<24x128xf32>
      %15 = arith.addf %12, %14 : vector<24x128xf32>
      %c0_14 = arith.constant 0 : index
      %c0_15 = arith.constant 0 : index
      %16 = vector.load %arg6[%c0_14, %c0_15] : memref<24x128xf32, #tpu.memory_space<vmem>>, vector<24x128xf32>
      tpu.vector_store %arg6[%c0_14, %c0_15], %15 {strides = array<i32>} : memref<24x128xf32, #tpu.memory_space<vmem>>, vector<24x128xf32>,
    } else {
    }
    return
  }
  func.func @transform_0(%arg0: i32, %arg1: i32, %arg2: i32) -> (i32, i32) {
    %c0_i32 = arith.constant 0 : i32
    return %arg0, %arg2 : i32, i32
  }
  func.func @transform_1(%arg0: i32, %arg1: i32, %arg2: i32) -> (i32, i32) {
    %c0_i32 = arith.constant 0 : i32
    return %arg2, %arg1 : i32, i32
  }
  func.func @transform_2(%arg0: i32, %arg1: i32, %arg2: i32) -> (i32, i32) {
    %c0_i32 = arith.constant 0 : i32
    %c0_i32_0 = arith.constant 0 : i32
    return %c0_i32, %arg1 : i32, i32
  }
  func.func @transform_3(%arg0: i32, %arg1: i32, %arg2: i32) -> (i32, i32) {
    %c0_i32 = arith.constant 0 : i32
    return %arg0, %arg1 : i32, i32
  }
}

</mosaic_0001>

<bundles_post_ra>
// kernel: tpu_custom_call.1
= control target key start
LH: loop header
LB: loop body
LE: loop exit
PB: predicated region body
PF: predicated region fallthrough
CT: control target
= control target key end

     0   :  { %8 = vsyncpa [#allocation4], 0  ;;  %s372_s0 = inlined_call_operand.hbm [shape: bf16[24,128], index: 0, kind: input, shape index: {}]   ;;  %s373_s1 = inlined_call_operand.hbm [shape: bf16[128,128], index: 1, kind: input, shape index: {}]   ;;  %s374_s2 = inlined_call_operand.vmem [shape: f32[1,128], index: 2, kind: input, shape index: {}]   ;;  %s375_s3 = inlined_call_operand.hbm [shape: f32[24,128], index: 3, kind: output, shape index: {}]  }
   0x1   :  { %9 = vsyncpa [#allocation7], 0 }
   0x2   :  { %10 = vsyncpa [#allocation5], 0  ;;  %s15_s14 = sshll.u32 %s372_s0, 4  ;;  %s333_s15 = smov [#allocation3]   ;;  %s16_s14 = int_to_ptr.hbm [resolvable:$true] %s15_s14 }
   0x3   :  { %s17_s16 = sshll.u32 %s333_s15, 4  ;;  %s28_s19 = sshll.u32 %s373_s1, 4  ;;  %s18_s16 = int_to_ptr.vmem [resolvable:$true] %s17_s16  ;;  %s29_s19 = int_to_ptr.hbm [resolvable:$true] %s28_s19 }
   0x4   :  { %s334_s20 = smov 64   ;;  %s335_s21 = smov 4  }
   0x5   :  { %23 = dma.hbm_to_vmem [thread:$0]  %s16_s14, 192, %s18_s16, [#allocation4], %s334_s20, %s334_s20, %s335_s21  }
   0x6   :  { %s336_s22 = smov [#allocation6]  }
   0x7   :  { %s30_s23 = sshll.u32 %s336_s22, 4  ;;  %s31_s23 = int_to_ptr.vmem [resolvable:$true] %s30_s23 }
   0x8   :  { %36 = dma.hbm_to_vmem [thread:$0]  %s29_s19, 1024, %s31_s23, [#allocation7], %s334_s20, %s334_s20, %s335_s21  }
   0x9   :  { %327 = dma.done.wait [#allocation4], 192  }
   0xa   :  { %328 = vsyncadd [#allocation4], 4294967104 }
   0xb   :  { %329 = dma.done.wait [#allocation7], 1024  }
   0xc   :  { %330 = vsyncadd [#allocation7], 4294966272  ;;  %v238_v0 = vld [vmem:[#allocation6 + $0x38] sm:$0xff]  ;;  %v237_v1 = vld [vmem:[#allocation6 + $0x30] sm:$0xff]  ;;  %s337_s24 = smov [#allocation8]   ;;  %s180_s28 = sshll.u32 %s375_s3, 4  ;;  %s181_s28 = int_to_ptr.hbm [resolvable:$true] %s180_s28 }
   0xd   :  { %134 = vmatpush.bf16.msra.mxu0 %v238_v0  ;;  %239 = vmatpush.bf16.msra.mxu1 %v238_v0  ;;  %v236_v2 = vld [vmem:[#allocation6 + $0x28] sm:$0xff]  ;;  %v235_v3 = vld [vmem:[#allocation6 + $0x20] sm:$0xff]  ;;  %v234_v4 = vld [vmem:[#allocation6 + $0x18] sm:$0xff]  ;;  %s178_s25 = sshll.u32 %s337_s24, 4  ;;  %s338_s29 = smov 128   ;;  %s179_s25 = int_to_ptr.vmem [resolvable:$true] %s178_s25 }
   0xe   :  { %v233_v5 = vld [vmem:[#allocation6 + $0x10] sm:$0xff]  ;;  %v232_v6 = vld [vmem:[#allocation6 + $0x8] sm:$0xff]  ;;  %v59_v7 = vld [vmem:[#allocation3 + $0x8] sm:$0xf] }
   0xf   :  { %v81_v8 = vunpack.c.l.b16 %v59_v7  ;;  %v231_v9 = vld [vmem:[#allocation6] sm:$0xff]  ;;  %v230_v10 = vld [vmem:[#allocation3] sm:$0xff] }
  0x10   :  { %v254_v12 = vld [vmem:[%s374_s2] ss:$0 sm:$0xff]  ;;  %s339_s2 = smov 8  }
  0x11   :  { %135 = vmatpush.bf16.msra.mxu0 %v237_v1  ;;  %240 = vmatpush.bf16.msra.mxu1 %v237_v1  ;;  %v83_v11 = vpack.c.b16 %v81_v8, %v81_v8 }
  0x15   :  { %136 = vmatpush.bf16.msra.mxu0 %v236_v2  ;;  %241 = vmatpush.bf16.msra.mxu1 %v236_v2 }
  0x19   :  { %137 = vmatpush.bf16.msra.mxu0 %v235_v3  ;;  %242 = vmatpush.bf16.msra.mxu1 %v235_v3 }
  0x1d   :  { %138 = vmatpush.bf16.msra.mxu0 %v234_v4  ;;  %243 = vmatpush.bf16.msra.mxu1 %v234_v4 }
  0x21   :  { %139 = vmatpush.bf16.msra.mxu0 %v233_v5  ;;  %244 = vmatpush.bf16.msra.mxu1 %v233_v5 }
  0x25   :  { %140 = vmatpush.bf16.msra.mxu0 %v232_v6  ;;  %245 = vmatpush.bf16.msra.mxu1 %v232_v6 }
  0x29   :  { %141 = vmatpush.bf16.msra.mxu0 %v231_v9  ;;  %246 = vmatpush.bf16.msra.mxu1 %v231_v9 }
  0x2c   :  { %142 = vmatmul.bf16.vlgmr.msra.gmra.mxu0 %v230_v10  ;;  %147 = vmatmul.bf16.vlgmr.msra.gmra.mxu1 %v83_v11 }
  0xa9   :  { %v143_v13 = vpop.f32.mrf.mxu0  ;;  %v148_v14 = vpop.f32.mrf.mxu1 }
  0xaa   :  { %v168_v15 = vadd.f32 %v254_v12, %v143_v13  ;;  %v170_v16 = vadd.f32 %v254_v12, %v148_v14 }
  0xac   :  { %171 = vst [vmem:[#allocation8] sm:$0xff] %v168_v15 }
  0xad   :  { %173 = vst [vmem:[#allocation8 + $0x10] sm:$0xff] %v170_v16 }
  0xb1   :  { %v145_v17 = vpop.f32.mrf.mxu0  ;;  %v150_v18 = vpop.f32.mrf.mxu1 }
  0xb2   :  { %v169_v19 = vadd.f32 %v254_v12, %v145_v17 }
  0xb4   :  { %172 = vst [vmem:[#allocation8 + $0x8] sm:$0xff] %v169_v19 }
  0xb5   :  { %186 = dma.vmem_to_hbm [thread:$0]  %s179_s25, 384, %s181_s28, [#allocation5], %s338_s29, %s338_s29, %s339_s2  }
  0xb6   :  { %331 = dma.done.wait [#allocation5], 384  }
  0xb7   :  { %332 = vsyncadd [#allocation5], 4294966912 }
  0xb8   :  { %191 = vsyncpa [#allocation4], 1 }
  0xb9   :  { %192 = vsyncpa [#allocation7], 1 }
  0xba   :  { %193 = vsyncpa [#allocation5], 1 }

</bundles_post_ra>
